<compile_context>
chip_gen: v6e
topology: v6e:2x2x1
jax: 0.10.0
libtpu: 0.0.40
codegen_flags: <defaults>
</compile_context>

<pallas_src>
import jax
import jax.numpy as jnp
from jax.experimental import pallas as pl
from jax.experimental.pallas import tpu as pltpu

LANE = 128      # last-dim (lane) padding target
SUBLANE = 8     # batch (sublane) padding target


def _round_up(n, m):
    return ((n + m - 1) // m) * m


def _pad2d(a, rows, cols):
    r, c = a.shape
    return jnp.pad(a, ((0, rows - r), (0, cols - c)))


# ---------------------------------------------------------------------------
# Fused forward kernel (whole VAE in one pallas_call)
# ---------------------------------------------------------------------------
def _make_vae_kernel(n_enc, n_dec, l_pad, conditional):
    """Ref order:
         x, eps, [onehot],
         (enc_w, enc_b) * n_enc,
         w_meanlogvar, b_meanlogvar,
         dec0_w, dec0_b, [dec0_wc], (dec_w, dec_b) * (n_dec - 1),
         recon_out, mean_out, log_var_out, z_out
    """
    def kernel(*refs):
        it = iter(refs)
        x = next(it)[...]
        eps = next(it)[...]
        cond = next(it)[...] if conditional else None

        # Encoder MLP: Linear + ReLU
        h = x
        for _ in range(n_enc):
            w = next(it)[...]
            b = next(it)[...]
            h = jnp.maximum(
                jnp.dot(h, w, preferred_element_type=jnp.float32) + b, 0.0)

        # Fused fc_mean / fc_log_var: one matmul, split along lane boundary
        w = next(it)[...]
        b = next(it)[...]
        ml = jnp.dot(h, w, preferred_element_type=jnp.float32) + b
        mean = ml[:, :l_pad]
        log_var = ml[:, l_pad:]

        # Reparameterization trick: z = mean + eps * exp(0.5 * log_var)
        z = mean + eps * jnp.exp(0.5 * log_var)

        # Decoder MLP: Linear + ReLU ... Linear + Sigmoid
        d = z
        for i in range(n_dec):
            w = next(it)[...]
            b = next(it)[...]
            y = jnp.dot(d, w, preferred_element_type=jnp.float32) + b
            if i == 0 and conditional:
                wc = next(it)[...]
                y = y + jnp.dot(cond, wc, preferred_element_type=jnp.float32)
            if i + 1 < n_dec:
                d = jnp.maximum(y, 0.0)
            else:
                # sigmoid via EUP exp + EUP approx reciprocal (free slots)
                d = pl.reciprocal(1.0 + jnp.exp(-y), approx=True)

        recon_ref = next(it)
        mean_ref = next(it)
        log_var_ref = next(it)
        z_ref = next(it)
        recon_ref[...] = d
        mean_ref[...] = mean
        log_var_ref[...] = log_var
        z_ref[...] = z

    return kernel


# ---------------------------------------------------------------------------
# Parameter init (mirrors nn.Linear shapes; weights stored as (in, out))
# ---------------------------------------------------------------------------
def init_linear(key, in_features, out_features):
    kw, kb = jax.random.split(key)
    bound = 1.0 / jnp.sqrt(in_features)
    w = jax.random.uniform(kw, (in_features, out_features), jnp.float32,
                           -bound, bound)
    b = jax.random.uniform(kb, (out_features,), jnp.float32, -bound, bound)
    return w, b


def init_vae_params(key, en_layer_size, latent_size, de_layer_size,
                    conditional=False, num_labels=0):
    en_sizes = list(en_layer_size)
    if conditional:
        en_sizes[0] += num_labels
    de_in = latent_size + (num_labels if conditional else 0)
    de_sizes = [de_in] + list(de_layer_size)

    n_keys = (len(en_sizes) - 1) + 2 + (len(de_sizes) - 1)
    keys = jax.random.split(key, n_keys)
    ki = 0
    params = {"encoder_mlp": [], "decoder_mlp": []}
    for i in range(len(en_sizes) - 1):
        params["encoder_mlp"].append(
            init_linear(keys[ki], en_sizes[i], en_sizes[i + 1])); ki += 1
    params["fc_mean"] = init_linear(keys[ki], en_sizes[-1], latent_size); ki += 1
    params["fc_log_var"] = init_linear(keys[ki], en_sizes[-1], latent_size); ki += 1
    for i in range(len(de_sizes) - 1):
        params["decoder_mlp"].append(
            init_linear(keys[ki], de_sizes[i], de_sizes[i + 1])); ki += 1
    return params


# ---------------------------------------------------------------------------
# One-time packing: pad to lane/sublane-dense shapes, fuse mean/log_var
# ---------------------------------------------------------------------------
def pack_vae_params(params, latent_size, conditional=False, num_labels=0):
    l_pad = _round_up(latent_size, LANE)
    ops = []

    # Encoder layers
    for w, b in params["encoder_mlp"]:
        k, n = w.shape
        n_pad = _round_up(n, LANE)
        ops.append(_pad2d(w, _round_up(k, LANE), n_pad))
        ops.append(_pad2d(b.reshape(1, n), 1, n_pad))

    # fc_mean + fc_log_var fused side-by-side: (K_pad, 2*L_pad)
    wm, bm = params["fc_mean"]
    wv, bv = params["fc_log_var"]
    k = wm.shape[0]
    kp = _round_up(k, LANE)
    w_ml = jnp.zeros((kp, 2 * l_pad), jnp.float32)
    w_ml = w_ml.at[:k, :latent_size].set(wm)
    w_ml = w_ml.at[:k, l_pad:l_pad + latent_size].set(wv)
    b_ml = jnp.zeros((1, 2 * l_pad), jnp.float32)
    b_ml = b_ml.at[0, :latent_size].set(bm)
    b_ml = b_ml.at[0, l_pad:l_pad + latent_size].set(bv)
    ops += [w_ml, b_ml]

    # Decoder layers (first layer split into z-part / label-part if CVAE)
    cond_pad = _round_up(num_labels, LANE) if conditional else 0
    for i, (w, b) in enumerate(params["decoder_mlp"]):
        k, n = w.shape
        n_pad = _round_up(n, LANE)
        if i == 0 and conditional:
            ops.append(_pad2d(w[:latent_size], l_pad, n_pad))
            ops.append(_pad2d(b.reshape(1, n), 1, n_pad))
            ops.append(_pad2d(w[latent_size:], cond_pad, n_pad))
        else:
            ops.append(_pad2d(w, _round_up(k, LANE), n_pad))
            ops.append(_pad2d(b.reshape(1, n), 1, n_pad))

    return {
        "operands": ops,
        "n_enc": len(params["encoder_mlp"]),
        "n_dec": len(params["decoder_mlp"]),
        "latent_size": latent_size,
        "l_pad": l_pad,
        "out_features": params["decoder_mlp"][-1][0].shape[1],
        "conditional": conditional,
        "num_labels": num_labels,
        "cond_pad": cond_pad,
    }


def idx2onehot(idx, n):
    return jax.nn.one_hot(idx.reshape(-1), n, dtype=jnp.float32)


# ---------------------------------------------------------------------------
# Forward pass wrapper (pads inputs, one pallas_call, slices outputs)
# ---------------------------------------------------------------------------
def vae_forward(packed, x, eps, c=None):
    if x.ndim > 2:
        x = x.reshape(-1, 28 * 28)
    x = x.astype(jnp.float32)
    if packed["conditional"]:
        onehot = idx2onehot(c, packed["num_labels"])
        x = jnp.concatenate([x, onehot], axis=-1)

    B, K0 = x.shape
    b_pad = _round_up(B, SUBLANE)
    k0_pad = _round_up(K0, LANE)
    L = packed["latent_size"]
    l_pad = packed["l_pad"]
    out_n = packed["out_features"]
    out_pad = _round_up(out_n, LANE)

    inputs = [_pad2d(x, b_pad, k0_pad),
              _pad2d(eps.astype(jnp.float32), b_pad, l_pad)]
    if packed["conditional"]:
        inputs.append(_pad2d(onehot, b_pad, packed["cond_pad"]))
    inputs += packed["operands"]

    kernel = _make_vae_kernel(packed["n_enc"], packed["n_dec"], l_pad,
                              packed["conditional"])
    vmem = pl.BlockSpec(memory_space=pltpu.MemorySpace.VMEM)
    out_shape = (
        jax.ShapeDtypeStruct((b_pad, out_pad), jnp.float32),   # recon_x
        jax.ShapeDtypeStruct((b_pad, l_pad), jnp.float32),     # mean
        jax.ShapeDtypeStruct((b_pad, l_pad), jnp.float32),     # log_var
        jax.ShapeDtypeStruct((b_pad, l_pad), jnp.float32),     # z
    )
    # TODO(synk): for large batches, tile the batch dim with a "parallel" grid
    # axis (megacore on v7x) and re-derive the batch tile from scoped VMEM.
    recon_p, mean_p, log_var_p, z_p = pl.pallas_call(
        kernel,
        out_shape=out_shape,
        in_specs=[vmem] * len(inputs),
        out_specs=(vmem,) * 4,
    )(*inputs)

    return (recon_p[:B, :out_n], mean_p[:B, :L],
            log_var_p[:B, :L], z_p[:B, :L])


# ---------------------------------------------------------------------------
# Pure-JAX reference
# ---------------------------------------------------------------------------
def vae_forward_ref(params, x, eps, c=None, conditional=False, num_labels=0):
    if x.ndim > 2:
        x = x.reshape(-1, 28 * 28)
    if conditional:
        oh = idx2onehot(c, num_labels)
        x = jnp.concatenate([x, oh], axis=-1)
    h = x
    for w, b in params["encoder_mlp"]:
        h = jnp.maximum(h @ w + b, 0.0)
    mean = h @ params["fc_mean"][0] + params["fc_mean"][1]
    log_var = h @ params["fc_log_var"][0] + params["fc_log_var"][1]
    z = mean + eps * jnp.exp(0.5 * log_var)
    d = z
    if conditional:
        d = jnp.concatenate([d, oh], axis=-1)
    n_dec = len(params["decoder_mlp"])
    for i, (w, b) in enumerate(params["decoder_mlp"]):
        d = d @ w + b
        d = jnp.maximum(d, 0.0) if i + 1 < n_dec else jax.nn.sigmoid(d)
    return d, mean, log_var, z


if __name__ == "__main__":
    # Small, module-consistent shapes: encoder [64 -> 32], latent 16,
    # decoder [32 -> 64] (sigmoid output), batch 8.
    batch = 8
    en_layer_size = [64, 32]
    latent_size = 16
    de_layer_size = [32, 64]

    key = jax.random.PRNGKey(0)
    kp, kx, keps, kc = jax.random.split(key, 4)
    x = jax.random.normal(kx, (batch, en_layer_size[0]), jnp.float32)
    eps = jax.random.normal(keps, (batch, latent_size), jnp.float32)

    # --- unconditional VAE (module default) ---
    params = init_vae_params(kp, en_layer_size, latent_size, de_layer_size)
    packed = pack_vae_params(params, latent_size)
    fwd = jax.jit(lambda xx, ee: vae_forward(packed, xx, ee))
    recon_x, mean, log_var, z = fwd(x, eps)
    jax.block_until_ready((recon_x, mean, log_var, z))

    r_ref, m_ref, lv_ref, z_ref = vae_forward_ref(params, x, eps)
    assert recon_x.shape == (batch, de_layer_size[-1])
    assert mean.shape == (batch, latent_size)
    assert jnp.allclose(mean, m_ref, atol=1e-5)
    assert jnp.allclose(log_var, lv_ref, atol=1e-5)
    assert jnp.allclose(z, z_ref, atol=1e-5)
    # final sigmoid uses approx EUP reciprocal (~1e-4 abs err) -> looser atol
    assert jnp.allclose(recon_x, r_ref, atol=2e-3)

    # --- conditional VAE (CVAE) path ---
    num_labels = 10
    cparams = init_vae_params(kp, en_layer_size, latent_size, de_layer_size,
                              conditional=True, num_labels=num_labels)
    cpacked = pack_vae_params(cparams, latent_size, conditional=True,
                              num_labels=num_labels)
    c = jax.random.randint(kc, (batch,), 0, num_labels)
    cr, cm, clv, cz = vae_forward(cpacked, x, eps, c=c)
    jax.block_until_ready((cr, cm, clv, cz))
    cr_ref, cm_ref, clv_ref, cz_ref = vae_forward_ref(
        cparams, x, eps, c=c, conditional=True, num_labels=num_labels)
    assert jnp.allclose(cm, cm_ref, atol=1e-5)
    assert jnp.allclose(clv, clv_ref, atol=1e-5)
    assert jnp.allclose(cz, cz_ref, atol=1e-5)
    assert jnp.allclose(cr, cr_ref, atol=2e-3)

    print("KERNEL_OK")
</pallas_src>

<mosaic_0001>
module attributes {stable_mosaic.version = 11 : i64} {
  func.func @kernel(%arg0: memref<8x128xf32, #tpu.memory_space<vmem>>, %arg1: memref<8x128xf32, #tpu.memory_space<vmem>>, %arg2: memref<128x128xf32, #tpu.memory_space<vmem>>, %arg3: memref<1x128xf32, #tpu.memory_space<vmem>>, %arg4: memref<128x256xf32, #tpu.memory_space<vmem>>, %arg5: memref<1x256xf32, #tpu.memory_space<vmem>>, %arg6: memref<128x128xf32, #tpu.memory_space<vmem>>, %arg7: memref<1x128xf32, #tpu.memory_space<vmem>>, %arg8: memref<128x128xf32, #tpu.memory_space<vmem>>, %arg9: memref<1x128xf32, #tpu.memory_space<vmem>>, %arg10: memref<8x128xf32, #tpu.memory_space<vmem>>, %arg11: memref<8x128xf32, #tpu.memory_space<vmem>>, %arg12: memref<8x128xf32, #tpu.memory_space<vmem>>, %arg13: memref<8x128xf32, #tpu.memory_space<vmem>>) attributes {dimension_semantics = [], scalar_prefetch = 0 : i64, scratch_operands = 0 : i64, tpu.core_type = #tpu.core_type<tc>} {
    %c0 = arith.constant 0 : index
    %c0_0 = arith.constant 0 : index
    %0 = vector.load %arg0[%c0, %c0_0] : memref<8x128xf32, #tpu.memory_space<vmem>>, vector<8x128xf32>
    %c0_1 = arith.constant 0 : index
    %c0_2 = arith.constant 0 : index
    %1 = vector.load %arg1[%c0_1, %c0_2] : memref<8x128xf32, #tpu.memory_space<vmem>>, vector<8x128xf32>
    %c0_3 = arith.constant 0 : index
    %c0_4 = arith.constant 0 : index
    %2 = vector.load %arg2[%c0_3, %c0_4] : memref<128x128xf32, #tpu.memory_space<vmem>>, vector<128x128xf32>
    %c0_5 = arith.constant 0 : index
    %c0_6 = arith.constant 0 : index
    %3 = vector.load %arg3[%c0_5, %c0_6] : memref<1x128xf32, #tpu.memory_space<vmem>>, vector<1x128xf32>
    %cst = arith.constant dense<0.000000e+00> : vector<8x128xf32>
    %4 = tpu.matmul %0, %2, %cst {dimension_numbers = #tpu.dot_dimension_numbers<[1], [0], [0], [1], [0, 0, 1, 1], [], []>} : vector<8x128xf32>, vector<128x128xf32>, vector<8x128xf32> -> vector<8x128xf32>
    %5 = vector.broadcast %3 : vector<1x128xf32> to vector<8x128xf32>
    %6 = arith.addf %4, %5 : vector<8x128xf32>
    %cst_7 = arith.constant 0.000000e+00 : f32
    %7 = vector.broadcast %cst_7 : f32 to vector<8x128xf32>
    %8 = arith.maximumf %6, %7 : vector<8x128xf32>
    %c0_8 = arith.constant 0 : index
    %c0_9 = arith.constant 0 : index
    %9 = vector.load %arg4[%c0_8, %c0_9] : memref<128x256xf32, #tpu.memory_space<vmem>>, vector<128x256xf32>
    %c0_10 = arith.constant 0 : index
    %c0_11 = arith.constant 0 : index
    %10 = vector.load %arg5[%c0_10, %c0_11] : memref<1x256xf32, #tpu.memory_space<vmem>>, vector<1x256xf32>
    %cst_12 = arith.constant dense<0.000000e+00> : vector<8x256xf32>
    %11 = tpu.matmul %8, %9, %cst_12 {dimension_numbers = #tpu.dot_dimension_numbers<[1], [0], [0], [1], [0, 0, 1, 1], [], []>} : vector<8x128xf32>, vector<128x256xf32>, vector<8x256xf32> -> vector<8x256xf32>
    %12 = vector.broadcast %10 : vector<1x256xf32> to vector<8x256xf32>
    %13 = arith.addf %11, %12 : vector<8x256xf32>
    %14 = vector.extract_strided_slice %13 {offsets = [0, 0], sizes = [8, 128], strides = [1, 1]} : vector<8x256xf32> to vector<8x128xf32>
    %15 = vector.extract_strided_slice %13 {offsets = [0, 128], sizes = [8, 128], strides = [1, 1]} : vector<8x256xf32> to vector<8x128xf32>
    %cst_13 = arith.constant 5.000000e-01 : f32
    %16 = vector.broadcast %cst_13 : f32 to vector<8x128xf32>
    %17 = arith.mulf %16, %15 : vector<8x128xf32>
    %18 = math.exp %17 : vector<8x128xf32>
    %19 = arith.mulf %1, %18 : vector<8x128xf32>
    %20 = arith.addf %14, %19 : vector<8x128xf32>
    %c0_14 = arith.constant 0 : index
    %c0_15 = arith.constant 0 : index
    %21 = vector.load %arg6[%c0_14, %c0_15] : memref<128x128xf32, #tpu.memory_space<vmem>>, vector<128x128xf32>
    %c0_16 = arith.constant 0 : index
    %c0_17 = arith.constant 0 : index
    %22 = vector.load %arg7[%c0_16, %c0_17] : memref<1x128xf32, #tpu.memory_space<vmem>>, vector<1x128xf32>
    %cst_18 = arith.constant dense<0.000000e+00> : vector<8x128xf32>
    %23 = tpu.matmul %20, %21, %cst_18 {dimension_numbers = #tpu.dot_dimension_numbers<[1], [0], [0], [1], [0, 0, 1, 1], [], []>} : vector<8x128xf32>, vector<128x128xf32>, vector<8x128xf32> -> vector<8x128xf32>
    %24 = vector.broadcast %22 : vector<1x128xf32> to vector<8x128xf32>
    %25 = arith.addf %23, %24 : vector<8x128xf32>
    %cst_19 = arith.constant 0.000000e+00 : f32
    %26 = vector.broadcast %cst_19 : f32 to vector<8x128xf32>
    %27 = arith.maximumf %25, %26 : vector<8x128xf32>
    %c0_20 = arith.constant 0 : index
    %c0_21 = arith.constant 0 : index
    %28 = vector.load %arg8[%c0_20, %c0_21] : memref<128x128xf32, #tpu.memory_space<vmem>>, vector<128x128xf32>
    %c0_22 = arith.constant 0 : index
    %c0_23 = arith.constant 0 : index
    %29 = vector.load %arg9[%c0_22, %c0_23] : memref<1x128xf32, #tpu.memory_space<vmem>>, vector<1x128xf32>
    %cst_24 = arith.constant dense<0.000000e+00> : vector<8x128xf32>
    %30 = tpu.matmul %27, %28, %cst_24 {dimension_numbers = #tpu.dot_dimension_numbers<[1], [0], [0], [1], [0, 0, 1, 1], [], []>} : vector<8x128xf32>, vector<128x128xf32>, vector<8x128xf32> -> vector<8x128xf32>
    %31 = vector.broadcast %29 : vector<1x128xf32> to vector<8x128xf32>
    %32 = arith.addf %30, %31 : vector<8x128xf32>
    %cst_25 = arith.constant 0.000000e+00 : f32
    %33 = vector.broadcast %cst_25 : f32 to vector<8x128xf32>
    %34 = arith.subf %33, %32 : vector<8x128xf32>
    %35 = math.exp %34 : vector<8x128xf32>
    %cst_26 = arith.constant 1.000000e+00 : f32
    %36 = vector.broadcast %cst_26 : f32 to vector<8x128xf32>
    %37 = arith.addf %36, %35 : vector<8x128xf32>
    %38 = tpu.reciprocal %37 {approx = true} : vector<8x128xf32> -> vector<8x128xf32>
    %c0_27 = arith.constant 0 : index
    %c0_28 = arith.constant 0 : index
    %39 = vector.load %arg10[%c0_27, %c0_28] : memref<8x128xf32, #tpu.memory_space<vmem>>, vector<8x128xf32>
    tpu.vector_store %arg10[%c0_27, %c0_28], %38 {strides = array<i32>} : memref<8x128xf32, #tpu.memory_space<vmem>>, vector<8x128xf32>,
    %c0_29 = arith.constant 0 : index
    %c0_30 = arith.constant 0 : index
    %40 = vector.load %arg11[%c0_29, %c0_30] : memref<8x128xf32, #tpu.memory_space<vmem>>, vector<8x128xf32>
    tpu.vector_store %arg11[%c0_29, %c0_30], %14 {strides = array<i32>} : memref<8x128xf32, #tpu.memory_space<vmem>>, vector<8x128xf32>,
    %c0_31 = arith.constant 0 : index
    %c0_32 = arith.constant 0 : index
    %41 = vector.load %arg12[%c0_31, %c0_32] : memref<8x128xf32, #tpu.memory_space<vmem>>, vector<8x128xf32>
    tpu.vector_store %arg12[%c0_31, %c0_32], %15 {strides = array<i32>} : memref<8x128xf32, #tpu.memory_space<vmem>>, vector<8x128xf32>,
    %c0_33 = arith.constant 0 : index
    %c0_34 = arith.constant 0 : index
    %42 = vector.load %arg13[%c0_33, %c0_34] : memref<8x128xf32, #tpu.memory_space<vmem>>, vector<8x128xf32>
    tpu.vector_store %arg13[%c0_33, %c0_34], %20 {strides = array<i32>} : memref<8x128xf32, #tpu.memory_space<vmem>>, vector<8x128xf32>,
    return
  }
}

</mosaic_0001>

<bundles_post_ra>
// kernel: _lambda_.1
= control target key start
LH: loop header
LB: loop body
LE: loop exit
PB: predicated region body
PF: predicated region fallthrough
CT: control target
= control target key end

     0   :  { %19 = vsyncpa [#allocation3], 0  ;;  %s1099_s0 = inlined_call_operand.vmem [shape: f32[8,128], index: 0, kind: input, shape index: {}]   ;;  %s1100_s1 = inlined_call_operand.vmem [shape: f32[8,128], index: 1, kind: input, shape index: {}]   ;;  %s1101_s2 = inlined_call_operand.hbm [shape: f32[128,128], index: 2, kind: input, shape index: {}]   ;;  %s1102_s3 = inlined_call_operand.vmem [shape: f32[1,128], index: 3, kind: input, shape index: {}]   ;;  %s1103_s4 = inlined_call_operand.hbm [shape: f32[128,256], index: 4, kind: input, shape index: {}]   ;;  %s1104_s5 = inlined_call_operand.vmem [shape: f32[1,256], index: 5, kind: input, shape index: {}]   ;;  %s1105_s6 = inlined_call_operand.hbm [shape: f32[128,128], index: 6, kind: input, shape index: {}]   ;;  %s1106_s7 = inlined_call_operand.vmem [shape: f32[1,128], index: 7, kind: input, shape index: {}]   ;;  %s1107_s8 = inlined_call_operand.hbm [shape: f32[128,128], index: 8, kind: input, shape index: {}]   ;;  %s1108_s9 = inlined_call_operand.vmem [shape: f32[1,128], index: 9, kind: input, shape index: {}]   ;;  %s1109_s10 = inlined_call_operand.hbm [shape: f32[8,128], index: 10, kind: output, shape index: {0}]   ;;  %s1110_s11 = inlined_call_operand.hbm [shape: f32[8,128], index: 11, kind: output, shape index: {1}]   ;;  %s1111_s12 = inlined_call_operand.hbm [shape: f32[8,128], index: 12, kind: output, shape index: {2}]   ;;  %s1112_s13 = inlined_call_operand.hbm [shape: f32[8,128], index: 13, kind: output, shape index: {3}]  }
   0x1   :  { %20 = vsyncpa [#allocation6], 0 }
   0x2   :  { %21 = vsyncpa [#allocation9], 0 }
   0x3   :  { %22 = vsyncpa [#allocation4], 0 }
   0x4   :  { %23 = vsyncpa [#allocation12], 0 }
   0x5   :  { %24 = vsyncpa [#allocation15], 0  ;;  %s918_s25 = smov [#allocation5]  }
   0x6   :  { %s48_s26 = sshll.u32 %s918_s25, 4  ;;  %s49_s26 = int_to_ptr.vmem [resolvable:$true] %s48_s26 }
   0x7   :  { %s754_s27 = scalar_lea.vmem %s49_s26, 4096  ;;  %p759_p1 = scmp.lt.s32.totalorder %s49_s26, %s49_s26 }
   0x8   :  { %p755_p0 = scmp.ne.s32.totalorder %s49_s26, %s754_s27  ;;  %p760_p2 = scmp.lt.s32.totalorder %s754_s27, %s754_s27 }
   0xa   :  { %p761_p3 = por %p760_p2, %p759_p1 }
   0xc   :  { %p762_p4 = pnand %p761_p3, %p755_p0 }
   0xe   :  { %765 = shalt.err (!%p762_p4)
}
   0xf   :  { %s919_s28 = smov 256   ;;  %s920_s29 = smov 16  }
  0x10   :  { %54 = dma.hbm_to_vmem [thread:$0]  %s1103_s4, 4096, %s49_s26, [#allocation6], %s919_s28, %s919_s28, %s920_s29  }
  0x11   :  { %s921_s15 = smov [#allocation2]  }
  0x12   :  { %s34_s16 = sshll.u32 %s921_s15, 4  ;;  %s35_s16 = int_to_ptr.vmem [resolvable:$true] %s34_s16 }
  0x13   :  { %s774_s17 = scalar_lea.vmem %s35_s16, 2048  ;;  %p779_p6 = scmp.lt.s32.totalorder %s35_s16, %s35_s16 }
  0x14   :  { %p775_p5 = scmp.ne.s32.totalorder %s35_s16, %s774_s17  ;;  %p780_p7 = scmp.lt.s32.totalorder %s774_s17, %s774_s17 }
  0x16   :  { %p781_p8 = por %p780_p7, %p779_p6 }
  0x18   :  { %p782_p9 = pnand %p781_p8, %p775_p5 }
  0x1a   :  { %785 = shalt.err (!%p782_p9)
}
  0x1b   :  { %s922_s18 = smov 128   ;;  %s923_s19 = smov 8  }
  0x1c   :  { %40 = dma.hbm_to_vmem [thread:$0]  %s1101_s2, 2048, %s35_s16, [#allocation3], %s922_s18, %s922_s18, %s923_s19  }
  0x1d   :  { %s924_s22 = smov [#allocation7]   ;;  %s925_s24 = smov [#allocation8]  }
  0x1e   :  { %s62_s23 = sshll.u32 %s924_s22, 4  ;;  %s76_s4 = sshll.u32 %s925_s24, 4  ;;  %s63_s23 = int_to_ptr.vmem [resolvable:$true] %s62_s23  ;;  %s77_s4 = int_to_ptr.vmem [resolvable:$true] %s76_s4 }
  0x1f   :  { %s794_s25 = scalar_lea.vmem %s63_s23, 2048  ;;  %p799_p11 = scmp.lt.s32.totalorder %s63_s23, %s63_s23 }
  0x20   :  { %p795_p10 = scmp.ne.s32.totalorder %s63_s23, %s794_s25  ;;  %p800_p12 = scmp.lt.s32.totalorder %s794_s25, %s794_s25 }
  0x22   :  { %p801_p13 = por %p800_p12, %p799_p11 }
  0x24   :  { %p802_p0 = pnand %p801_p13, %p795_p10 }
  0x26   :  { %805 = shalt.err (!%p802_p0)
}
  0x27   :  { %68 = dma.hbm_to_vmem [thread:$0]  %s1105_s6, 2048, %s63_s23, [#allocation6], %s922_s18, %s922_s18, %s923_s19  }
  0x28   :  { %s814_s28 = scalar_lea.vmem %s77_s4, 2048  ;;  %p819_p2 = scmp.lt.s32.totalorder %s77_s4, %s77_s4 }
  0x29   :  { %p815_p1 = scmp.ne.s32.totalorder %s77_s4, %s814_s28  ;;  %p820_p3 = scmp.lt.s32.totalorder %s814_s28, %s814_s28 }
  0x2b   :  { %p821_p4 = por %p820_p3, %p819_p2 }
  0x2d   :  { %p822_p5 = pnand %p821_p4, %p815_p1 }
  0x2f   :  { %825 = shalt.err (!%p822_p5)
}
  0x30   :  { %82 = dma.hbm_to_vmem [thread:$0]  %s1107_s8, 2048, %s77_s4, [#allocation9], %s922_s18, %s922_s18, %s923_s19  }
  0x31   :  { %906 = dma.done.wait [#allocation3], 2048  }
  0x32   :  { %907 = vsyncadd [#allocation3], 4294965248 }
  0x33   :  { %908 = dma.done.wait [#allocation6], 6144  }
  0x34   :  { %909 = vsyncadd [#allocation6], 4294961152 }
  0x35   :  { %910 = dma.done.wait [#allocation9], 2048  }
  0x36   :  { %911 = vsyncadd [#allocation9], 4294965248  ;;  %v926_v0 = vmov 0.0   ;;  %vm927_vm0 = vmmov 0   ;;  %v114_v1 = vld [vmem:[#allocation2 + $0x78] sm:$0xff]  ;;  %v113_v2 = vld [vmem:[#allocation2 + $0x70] sm:$0xff] }
  0x37   :  { %621 = vmatprep.subr.mxu0 %v926_v0  ;;  %653 = vmatprep.mubr.msk.f32.mxu0 %vm927_vm0, %v926_v0  ;;  %v112_v3 = vld [vmem:[#allocation2 + $0x68] sm:$0xff]  ;;  %v111_v4 = vld [vmem:[#allocation2 + $0x60] sm:$0xff]  ;;  %v110_v5 = vld [vmem:[#allocation2 + $0x58] sm:$0xff] }
  0x38   :  { %301 = vmatprep.mubr.f32.mxu1 %v926_v0  ;;  %622 = vmatpush3.msra.mxu0 %v114_v1  ;;  %v224_v6 = vld [vmem:[#allocation5 + $0xf8] sm:$0xff]  ;;  %v223_v7 = vld [vmem:[#allocation5 + $0xf0] sm:$0xff]  ;;  %v222_v8 = vld [vmem:[#allocation5 + $0xe8] sm:$0xff] }
  0x39   :  { %623 = vmatprep.subr.mxu0 %v926_v0  ;;  %237 = vmatprep.subr.mxu1 %v224_v6  ;;  %v221_v9 = vld [vmem:[#allocation5 + $0xe0] sm:$0xff]  ;;  %v220_v10 = vld [vmem:[#allocation5 + $0xd8] sm:$0xff]  ;;  %v109_v11 = vld [vmem:[#allocation2 + $0x50] sm:$0xff] }
  0x3a   :  { %624 = vmatpush3.msra.mxu0 %v113_v2  ;;  %238 = vmatpush1.msra.mxu1 %v223_v7  ;;  %v219_v12 = vld [vmem:[#allocation5 + $0xd0] sm:$0xff]  ;;  %v218_v13 = vld [vmem:[#allocation5 + $0xc8] sm:$0xff]  ;;  %v217_v15 = vld [vmem:[#allocation5 + $0xc0] sm:$0xff] }
  0x3b   :  { %625 = vmatprep.subr.mxu0 %v926_v0  ;;  %239 = vmatprep.subr.mxu1 %v222_v8  ;;  %v108_v14 = vld [vmem:[#allocation2 + $0x48] sm:$0xff]  ;;  %v216_v16 = vld [vmem:[#allocation5 + $0xb8] sm:$0xff]  ;;  %v107_v17 = vld [vmem:[#allocation2 + $0x40] sm:$0xff] }
  0x3c   :  { %626 = vmatpush3.msra.mxu0 %v112_v3  ;;  %240 = vmatpush1.msra.mxu1 %v221_v9  ;;  %v215_v18 = vld [vmem:[#allocation5 + $0xb0] sm:$0xff]  ;;  %v214_v19 = vld [vmem:[#allocation5 + $0xa8] sm:$0xff]  ;;  %v106_v20 = vld [vmem:[#allocation2 + $0x38] sm:$0xff] }
  0x3d   :  { %627 = vmatprep.subr.mxu0 %v926_v0  ;;  %241 = vmatprep.subr.mxu1 %v220_v10  ;;  %v213_v21 = vld [vmem:[#allocation5 + $0xa0] sm:$0xff]  ;;  %v212_v22 = vld [vmem:[#allocation5 + $0x98] sm:$0xff]  ;;  %v105_v23 = vld [vmem:[#allocation2 + $0x30] sm:$0xff] }
  0x3e   :  { %628 = vmatpush3.msra.mxu0 %v111_v4  ;;  %242 = vmatpush1.msra.mxu1 %v219_v12  ;;  %v211_v24 = vld [vmem:[#allocation5 + $0x90] sm:$0xff]  ;;  %v210_v25 = vld [vmem:[#allocation5 + $0x88] sm:$0xff]  ;;  %v209_v27 = vld [vmem:[#allocation5 + $0x80] sm:$0xff] }
  0x3f   :  { %629 = vmatprep.subr.mxu0 %v926_v0  ;;  %243 = vmatprep.subr.mxu1 %v218_v13  ;;  %v104_v26 = vld [vmem:[#allocation2 + $0x28] sm:$0xff]  ;;  %v208_v28 = vld [vmem:[#allocation5 + $0x78] sm:$0xff]  ;;  %v103_v29 = vld [vmem:[#allocation2 + $0x20] sm:$0xff] }
  0x40   :  { %630 = vmatpush3.msra.mxu0 %v110_v5  ;;  %244 = vmatpush1.msra.mxu1 %v217_v15  ;;  %v207_v30 = vld [vmem:[#allocation5 + $0x70] sm:$0xff]  ;;  %v206_v31 = vld [vmem:[#allocation5 + $0x68] sm:$0xff]  ;;  %v102_v32 = vld [vmem:[#allocation2 + $0x18] sm:$0xff] }
  0x41   :  { %631 = vmatprep.subr.mxu0 %v926_v0  ;;  %245 = vmatprep.subr.mxu1 %v216_v16  ;;  %v205_v33 = vld [vmem:[#allocation5 + $0x60] sm:$0xff]  ;;  %v204_v34 = vld [vmem:[#allocation5 + $0x58] sm:$0xff]  ;;  %v101_v35 = vld [vmem:[#allocation2 + $0x10] sm:$0xff] }
  0x42   :  { %632 = vmatpush3.msra.mxu0 %v109_v11  ;;  %246 = vmatpush1.msra.mxu1 %v215_v18  ;;  %v203_v36 = vld [vmem:[#allocation5 + $0x50] sm:$0xff]  ;;  %v202_v37 = vld [vmem:[#allocation5 + $0x48] sm:$0xff]  ;;  %v201_v39 = vld [vmem:[#allocation5 + $0x40] sm:$0xff] }
  0x43   :  { %633 = vmatprep.subr.mxu0 %v926_v0  ;;  %247 = vmatprep.subr.mxu1 %v214_v19  ;;  %v100_v38 = vld [vmem:[#allocation2 + $0x8] sm:$0xff]  ;;  %v200_v40 = vld [vmem:[#allocation5 + $0x38] sm:$0xff]  ;;  %v99_v41 = vld [vmem:[#allocation2] sm:$0xff] }
  0x44   :  { %634 = vmatpush3.msra.mxu0 %v108_v14  ;;  %248 = vmatpush1.msra.mxu1 %v213_v21  ;;  %v199_v42 = vld [vmem:[#allocation5 + $0x30] sm:$0xff]  ;;  %v97_v43 = vld [vmem:[%s1099_s0] sm:$0xff]  ;;  %v198_v44 = vld [vmem:[#allocation5 + $0x28] sm:$0xff]  ;;  %v227_v21 = vlaneseq }
  0x45   :  { %635 = vmatprep.subr.mxu0 %v926_v0  ;;  %249 = vmatprep.subr.mxu1 %v212_v22  ;;  %v197_v45 = vld [vmem:[#allocation5 + $0x20] sm:$0xff]  ;;  %v196_v46 = vld [vmem:[#allocation5 + $0x18] sm:$0xff]  ;;  %v195_v47 = vld [vmem:[#allocation5 + $0x10] sm:$0xff] }
  0x46   :  { %636 = vmatpush3.msra.mxu0 %v107_v17  ;;  %250 = vmatpush1.msra.mxu1 %v211_v24  ;;  %v194_v48 = vld [vmem:[#allocation5 + $0x8] sm:$0xff]  ;;  %v193_v49 = vld [vmem:[#allocation5] sm:$0xff]  ;;  %v328_v50 = vld [vmem:[#allocation7 + $0x78] sm:$0xff]  ;;  %v228_v22 = vshrl.u32 %v227_v21, 7 }
  0x47   :  { %637 = vmatprep.subr.mxu0 %v926_v0  ;;  %251 = vmatprep.subr.mxu1 %v210_v25  ;;  %v327_v51 = vld [vmem:[#allocation7 + $0x70] sm:$0xff]  ;;  %v567_v52 = vld [vmem:[%s1102_s3] ss:$0 sm:$0xff]  ;;  %v326_v57 = vld [vmem:[#allocation7 + $0x68] sm:$0xff] }
  0x48   :  { %638 = vmatpush3.msra.mxu0 %v106_v20  ;;  %252 = vmatpush1.msra.mxu1 %v209_v27  ;;  %v325_v58 = vld [vmem:[#allocation7 + $0x60] sm:$0xff]  ;;  %v324_v59 = vld [vmem:[#allocation7 + $0x58] sm:$0xff]  ;;  %v323_v60 = vld [vmem:[#allocation7 + $0x50] sm:$0xff]  ;;  %v233_v25 = vsub.s32 1, %v228_v22 }
  0x49   :  { %639 = vmatprep.subr.mxu0 %v926_v0  ;;  %253 = vmatprep.subr.mxu1 %v208_v28  ;;  %v322_v61 = vld [vmem:[#allocation7 + $0x48] sm:$0xff]  ;;  %v321_v62 = vld [vmem:[#allocation7 + $0x40] sm:$0xff]  ;;  %v320_v63 = vld [vmem:[#allocation7 + $0x38] sm:$0xff] }
  0x4a   :  { %640 = vmatpush3.msra.mxu0 %v105_v23  ;;  %254 = vmatpush1.msra.mxu1 %v207_v30  ;;  %v319_v1 = vld [vmem:[#allocation7 + $0x30] sm:$0xff]  ;;  %v318_v2 = vld [vmem:[#allocation7 + $0x28] sm:$0xff]  ;;  %v317_v3 = vld [vmem:[#allocation7 + $0x20] sm:$0xff]  ;;  %v229_v23 = vsub.s32 0, %v228_v22 }
  0x4b   :  { %641 = vmatprep.subr.mxu0 %v926_v0  ;;  %255 = vmatprep.subr.mxu1 %v206_v31  ;;  %v316_v4 = vld [vmem:[#allocation7 + $0x18] sm:$0xff]  ;;  %v315_v5 = vld [vmem:[#allocation7 + $0x10] sm:$0xff]  ;;  %v314_v6 = vld [vmem:[#allocation7 + $0x8] sm:$0xff] }
  0x4c   :  { %642 = vmatpush3.msra.mxu0 %v104_v26  ;;  %256 = vmatpush1.msra.mxu1 %v205_v33  ;;  %v313_v7 = vld [vmem:[#allocation7] sm:$0xff]  ;;  %v422_v8 = vld [vmem:[#allocation8 + $0x78] sm:$0xff]  ;;  %v421_v9 = vld [vmem:[#allocation8 + $0x70] sm:$0xff] }
  0x4d   :  { %643 = vmatprep.subr.mxu0 %v926_v0  ;;  %257 = vmatprep.subr.mxu1 %v204_v34  ;;  %v420_v10 = vld [vmem:[#allocation8 + $0x68] sm:$0xff]  ;;  %v419_v11 = vld [vmem:[#allocation8 + $0x60] sm:$0xff]  ;;  %v418_v12 = vld [vmem:[#allocation8 + $0x58] sm:$0xff] }
  0x4e   :  { %644 = vmatpush3.msra.mxu0 %v103_v29  ;;  %258 = vmatpush1.msra.mxu1 %v203_v36  ;;  %v417_v13 = vld [vmem:[#allocation8 + $0x50] sm:$0xff]  ;;  %v416_v14 = vld [vmem:[#allocation8 + $0x48] sm:$0xff]  ;;  %v415_v15 = vld [vmem:[#allocation8 + $0x40] sm:$0xff] }
  0x4f   :  { %645 = vmatprep.subr.mxu0 %v926_v0  ;;  %259 = vmatprep.subr.mxu1 %v202_v37  ;;  %v414_v16 = vld [vmem:[#allocation8 + $0x38] sm:$0xff]  ;;  %v413_v17 = vld [vmem:[#allocation8 + $0x30] sm:$0xff]  ;;  %v412_v18 = vld [vmem:[#allocation8 + $0x28] sm:$0xff] }
  0x50   :  { %646 = vmatpush3.msra.mxu0 %v102_v32  ;;  %260 = vmatpush1.msra.mxu1 %v201_v39  ;;  %v411_v19 = vld [vmem:[#allocation8 + $0x20] sm:$0xff]  ;;  %v410_v20 = vld [vmem:[#allocation8 + $0x18] sm:$0xff]  ;;  %v408_v39 = vld [vmem:[#allocation8 + $0x8] sm:$0xff] }
  0x51   :  { %647 = vmatprep.subr.mxu0 %v926_v0  ;;  %261 = vmatprep.subr.mxu1 %v200_v40  ;;  %v225_v24 = vld [vmem:[%s1104_s5] sm:$0x3] }
  0x52   :  { %648 = vmatpush3.msra.mxu0 %v101_v35  ;;  %262 = vmatpush1.msra.mxu1 %v199_v42  ;;  %v230_v26 = vrot.slane %v225_v24, %v229_v23  ;;  %v234_v27 = vrot.slane %v225_v24, %v233_v25  ;;  %v98_v34 = vld [vmem:[%s1100_s1] sm:$0xff]  ;;  %s928_s1 = smov [#allocation11]  }
  0x53   :  { %649 = vmatprep.subr.mxu0 %v926_v0  ;;  %263 = vmatprep.subr.mxu1 %v198_v44  ;;  %v407_v40 = vld [vmem:[#allocation8] sm:$0xff]  ;;  %s525_s18 = sshll.u32 %s928_s1, 4  ;;  %s526_s18 = int_to_ptr.vmem [resolvable:$true] %s525_s18 }
  0x54   :  { %650 = vmatpush3.msra.mxu0 %v100_v38  ;;  %264 = vmatpush1.msra.mxu1 %v197_v45  ;;  %v409_v38 = vld [vmem:[#allocation8 + $0x10] sm:$0xff]  ;;  %s826_s19 = scalar_lea.vmem %s526_s18, 128  ;;  %p831_p7 = scmp.lt.s32.totalorder %s526_s18, %s526_s18 }
  0x55   :  { %651 = vmatprep.subr.mxu0 %v926_v0  ;;  %265 = vmatprep.subr.mxu1 %v196_v46  ;;  %p827_p6 = scmp.ne.s32.totalorder %s526_s18, %s826_s19  ;;  %p832_p8 = scmp.lt.s32.totalorder %s826_s19, %s826_s19 }
  0x56   :  { %652 = vmatpush3.msra.mxu0 %v99_v41  ;;  %266 = vmatpush1.msra.mxu1 %v195_v47  ;;  %v568_v41 = vld [vmem:[%s1106_s7] ss:$0 sm:$0xff] }
  0x57   :  { %654 = vmatmul.mubr.f32.vlgmr.msra.gmra.mxu0 %v97_v43  ;;  %656 = vmatprep.subr.mxu0 %v926_v0  ;;  %p833_p9 = por %p832_p8, %p831_p7 }
  0x58   :  { %688 = vmatprep.mubr.msk.f32.mxu0 %vm927_vm0, %v926_v0  ;;  %267 = vmatprep.subr.mxu1 %v194_v48 }
  0x59   :  { %268 = vmatpush1.msra.mxu1 %v193_v49  ;;  %657 = vmatpush3.msra.mxu0 %v328_v50  ;;  %p834_p10 = pnand %p833_p9, %p827_p6 }
  0x5a   :  { %691 = vmatprep.subr.mxu1 %v926_v0  ;;  %658 = vmatprep.subr.mxu0 %v926_v0 }
  0x5b   :  { %659 = vmatpush3.msra.mxu0 %v327_v51 }
  0x5c   :  { %660 = vmatprep.subr.mxu0 %v926_v0 }
  0x5d   :  { %661 = vmatpush3.msra.mxu0 %v326_v57 }
  0x5e   :  { %662 = vmatprep.subr.mxu0 %v926_v0 }
  0x5f   :  { %663 = vmatpush3.msra.mxu0 %v325_v58 }
  0x60   :  { %664 = vmatprep.subr.mxu0 %v926_v0 }
  0x61   :  { %665 = vmatpush3.msra.mxu0 %v324_v59 }
  0x62   :  { %666 = vmatprep.subr.mxu0 %v926_v0 }
  0x63   :  { %667 = vmatpush3.msra.mxu0 %v323_v60 }
  0x64   :  { %668 = vmatprep.subr.mxu0 %v926_v0 }
  0x65   :  { %669 = vmatpush3.msra.mxu0 %v322_v61 }
  0x66   :  { %670 = vmatprep.subr.mxu0 %v926_v0 }
  0x67   :  { %671 = vmatpush3.msra.mxu0 %v321_v62 }
  0x68   :  { %672 = vmatprep.subr.mxu0 %v926_v0 }
  0x69   :  { %673 = vmatpush3.msra.mxu0 %v320_v63 }
  0x6a   :  { %674 = vmatprep.subr.mxu0 %v926_v0 }
  0x6b   :  { %675 = vmatpush3.msra.mxu0 %v319_v1 }
  0x6c   :  { %676 = vmatprep.subr.mxu0 %v926_v0 }
  0x6d   :  { %677 = vmatpush3.msra.mxu0 %v318_v2 }
  0x6e   :  { %678 = vmatprep.subr.mxu0 %v926_v0 }
  0x6f   :  { %679 = vmatpush3.msra.mxu0 %v317_v3 }
  0x70   :  { %680 = vmatprep.subr.mxu0 %v926_v0 }
  0x71   :  { %681 = vmatpush3.msra.mxu0 %v316_v4 }
  0x72   :  { %682 = vmatprep.subr.mxu0 %v926_v0 }
  0x73   :  { %683 = vmatpush3.msra.mxu0 %v315_v5 }
  0x74   :  { %684 = vmatprep.subr.mxu0 %v926_v0 }
  0x75   :  { %685 = vmatpush3.msra.mxu0 %v314_v6 }
  0x76   :  { %686 = vmatprep.subr.mxu0 %v926_v0 }
  0x77   :  { %687 = vmatpush3.msra.mxu0 %v313_v7 }
 0x117   :  { %v188_v53 = vpop.f32.mrf.mxu0 }
 0x118   :  { %v189_v54 = vadd.f32 %v567_v52, %v188_v53 }
 0x119   :  { %v655_v55 = vpop.f32.mrf.mxu0 }
 0x11a   :  { %v192_v56 = vmax.f32 %v189_v54, 0.0 }
 0x11c   :  { %302 = vmatmul.mubr.f32.vlgmr.msra.gmra.mxu1 %v192_v56 }
 0x11d   :  { %723 = vmatprep.mubr.msk.f32.mxu1 %vm927_vm0, %v926_v0  ;;  %692 = vmatpush3.msra.mxu1 %v422_v8 }
 0x11e   :  { %693 = vmatprep.subr.mxu1 %v926_v0 }
 0x11f   :  { %694 = vmatpush3.msra.mxu1 %v421_v9 }
 0x120   :  { %695 = vmatprep.subr.mxu1 %v926_v0 }
 0x121   :  { %696 = vmatpush3.msra.mxu1 %v420_v10 }
 0x122   :  { %697 = vmatprep.subr.mxu1 %v926_v0 }
 0x123   :  { %698 = vmatpush3.msra.mxu1 %v419_v11 }
 0x124   :  { %699 = vmatprep.subr.mxu1 %v926_v0 }
 0x125   :  { %700 = vmatpush3.msra.mxu1 %v418_v12 }
 0x126   :  { %701 = vmatprep.subr.mxu1 %v926_v0 }
 0x127   :  { %702 = vmatpush3.msra.mxu1 %v417_v13 }
 0x128   :  { %703 = vmatprep.subr.mxu1 %v926_v0 }
 0x129   :  { %704 = vmatpush3.msra.mxu1 %v416_v14 }
 0x12a   :  { %705 = vmatprep.subr.mxu1 %v926_v0 }
 0x12b   :  { %706 = vmatpush3.msra.mxu1 %v415_v15 }
 0x12c   :  { %707 = vmatprep.subr.mxu1 %v926_v0 }
 0x12d   :  { %708 = vmatpush3.msra.mxu1 %v414_v16 }
 0x12e   :  { %709 = vmatprep.subr.mxu1 %v926_v0 }
 0x12f   :  { %710 = vmatpush3.msra.mxu1 %v413_v17 }
 0x130   :  { %711 = vmatprep.subr.mxu1 %v926_v0 }
 0x131   :  { %712 = vmatpush3.msra.mxu1 %v412_v18 }
 0x132   :  { %713 = vmatprep.subr.mxu1 %v926_v0 }
 0x133   :  { %714 = vmatpush3.msra.mxu1 %v411_v19 }
 0x134   :  { %715 = vmatprep.subr.mxu1 %v926_v0 }
 0x135   :  { %716 = vmatpush3.msra.mxu1 %v410_v20 }
 0x136   :  { %717 = vmatprep.subr.mxu1 %v926_v0 }
 0x137   :  { %718 = vmatpush3.msra.mxu1 %v409_v38 }
 0x138   :  { %719 = vmatprep.subr.mxu1 %v926_v0 }
 0x139   :  { %720 = vmatpush3.msra.mxu1 %v408_v39 }
 0x13a   :  { %721 = vmatprep.subr.mxu1 %v926_v0 }
 0x13b   :  { %722 = vmatpush3.msra.mxu1 %v407_v40 }
 0x1dc   :  { %v303_v28 = vpop.f32.mrf.mxu1 }
 0x1dd   :  { %v304_v29 = vadd.f32 %v303_v28, %v230_v26 }
 0x1de   :  { %v305_v30 = vpop.f32.mrf.mxu1 }
 0x1df   :  { %506 = vst [vmem:[#allocation11] sm:$0xff] %v304_v29  ;;  %v306_v31 = vadd.f32 %v305_v30, %v234_v27 }
 0x1e1   :  { %v308_v32 = vmul.f32 0.5, %v306_v31  ;;  %507 = vst [vmem:[#allocation13] sm:$0xff] %v306_v31 }
 0x1e3   :  { %v309_v33 = vmul.f32 1.442695, %v308_v32 }
 0x1e5   :  { %740 = vpow2.f32 %v309_v33 }
 0x1f2   :  { %v741_v35 = vpop.eup %740 }
 0x1f3   :  { %v311_v36 = vmul.f32 %v741_v35, %v98_v34 }
 0x1f5   :  { %v312_v37 = vadd.f32 %v311_v36, %v304_v29 }
 0x1f7   :  { %689 = vmatmul.mubr.f32.vlgmr.msra.gmra.mxu0 %v312_v37  ;;  %508 = vst [vmem:[#allocation14] sm:$0xff] %v312_v37 }
 0x2b7   :  { %v402_v42 = vpop.f32.mrf.mxu0 }
 0x2b8   :  { %v403_v43 = vadd.f32 %v568_v41, %v402_v42 }
 0x2b9   :  { %v690_v44 = vpop.f32.mrf.mxu0 }
 0x2ba   :  { %v406_v45 = vmax.f32 %v403_v43, 0.0 }
 0x2bc   :  { %724 = vmatmul.mubr.f32.vlgmr.msra.gmra.mxu1 %v406_v45 }
 0x2bd   :  { %837 = shalt.err (!%p834_p10)
}
 0x2be   :  { %528 = dma.vmem_to_hbm [thread:$0]  %s526_s18, 128, %s1110_s11, [#allocation12]  }
 0x2bf   :  { %s929_s7 = smov [#allocation13]   ;;  %s930_s23 = smov [#allocation14]  }
 0x2c0   :  { %s535_s22 = sshll.u32 %s929_s7, 4  ;;  %s545_s24 = sshll.u32 %s930_s23, 4  ;;  %s536_s22 = int_to_ptr.vmem [resolvable:$true] %s535_s22  ;;  %s546_s24 = int_to_ptr.vmem [resolvable:$true] %s545_s24 }
 0x2c1   :  { %s846_s4 = scalar_lea.vmem %s536_s22, 128  ;;  %p851_p12 = scmp.lt.s32.totalorder %s536_s22, %s536_s22 }
 0x2c2   :  { %p847_p11 = scmp.ne.s32.totalorder %s536_s22, %s846_s4  ;;  %p852_p13 = scmp.lt.s32.totalorder %s846_s4, %s846_s4 }
 0x2c4   :  { %p853_p0 = por %p852_p13, %p851_p12 }
 0x2c6   :  { %p854_p1 = pnand %p853_p0, %p847_p11 }
 0x2c8   :  { %857 = shalt.err (!%p854_p1)
}
 0x2c9   :  { %538 = dma.vmem_to_hbm [thread:$0]  %s536_s22, 128, %s1111_s12, [#allocation12]  }
 0x2ca   :  { %s866_s27 = scalar_lea.vmem %s546_s24, 128  ;;  %p871_p3 = scmp.lt.s32.totalorder %s546_s24, %s546_s24 }
 0x2cb   :  { %p867_p2 = scmp.ne.s32.totalorder %s546_s24, %s866_s27  ;;  %p872_p4 = scmp.lt.s32.totalorder %s866_s27, %s866_s27 }
 0x2cd   :  { %p873_p5 = por %p872_p4, %p871_p3 }
 0x2cf   :  { %p874_p6 = pnand %p873_p5, %p867_p2 }
 0x2d1   :  { %877 = shalt.err (!%p874_p6)
}
 0x2d2   :  { %548 = dma.vmem_to_hbm [thread:$0]  %s546_s24, 128, %s1112_s13, [#allocation15]   ;;  %v569_v0 = vld [vmem:[%s1108_s9] ss:$0 sm:$0xff] }
 0x2d3   :  { %s931_s12 = smov [#allocation10]  }
 0x2d4   :  { %s515_s6 = sshll.u32 %s931_s12, 4  ;;  %s516_s6 = int_to_ptr.vmem [resolvable:$true] %s515_s6 }
 0x2d5   :  { %s886_s8 = scalar_lea.vmem %s516_s6, 128  ;;  %p891_p8 = scmp.lt.s32.totalorder %s516_s6, %s516_s6 }
 0x2d6   :  { %p887_p7 = scmp.ne.s32.totalorder %s516_s6, %s886_s8  ;;  %p892_p9 = scmp.lt.s32.totalorder %s886_s8, %s886_s8 }
 0x2d8   :  { %p893_p10 = por %p892_p9, %p891_p8 }
 0x2da   :  { %p894_p11 = pnand %p893_p10, %p887_p7 }
 0x37c   :  { %v496_v46 = vpop.f32.mrf.mxu1 }
 0x37d   :  { %v497_v47 = vadd.f32 %v569_v0, %v496_v46 }
 0x37e   :  { %v725_v48 = vpop.f32.mrf.mxu1 }
 0x37f   :  { %v500_v49 = vsub.f32 0.0, %v497_v47 }
 0x381   :  { %v501_v50 = vmul.f32 1.442695, %v500_v49 }
 0x383   :  { %742 = vpow2.f32 %v501_v50 }
 0x390   :  { %v743_v51 = vpop.eup %742 }
 0x391   :  { %v503_v52 = vadd.f32 1.0, %v743_v51 }
 0x393   :  { %744 = vrcp.f32 %v503_v52 }
 0x3a0   :  { %v745_v53 = vpop.eup %744 }
 0x3a1   :  { %505 = vst [vmem:[#allocation10] sm:$0xff] %v745_v53 }
 0x3a2   :  { %897 = shalt.err (!%p894_p11)
}
 0x3a3   :  { %518 = dma.vmem_to_hbm [thread:$0]  %s516_s6, 128, %s1109_s10, [#allocation4]  }
 0x3a4   :  { %912 = dma.done.wait [#allocation4], 128  }
 0x3a5   :  { %913 = vsyncadd [#allocation4], 4294967168 }
 0x3a6   :  { %914 = dma.done.wait [#allocation12], 256  }
 0x3a7   :  { %915 = vsyncadd [#allocation12], 4294967040 }
 0x3a8   :  { %916 = dma.done.wait [#allocation15], 128  }
 0x3a9   :  { %917 = vsyncadd [#allocation15], 4294967168 }
 0x3aa   :  { %561 = vsyncpa [#allocation3], 1 }
 0x3ab   :  { %562 = vsyncpa [#allocation6], 1 }
 0x3ac   :  { %563 = vsyncpa [#allocation9], 1 }
 0x3ad   :  { %564 = vsyncpa [#allocation4], 1 }
 0x3ae   :  { %565 = vsyncpa [#allocation12], 1 }
 0x3af   :  { %566 = vsyncpa [#allocation15], 1 }

</bundles_post_ra>
